<compile_context>
chip_gen: v7x
topology: tpu7x:2x2x1
jax: 0.10.0
libtpu: 0.0.40
codegen_flags: <defaults>
</compile_context>

<pallas_src>
import functools

import jax
import jax.numpy as jnp
import numpy as np
from jax.experimental import pallas as pl
from jax.experimental.pallas import tpu as pltpu

EPS = 1e-12                 # torch F.normalize default eps
EPS_SQ = EPS * EPS          # rsqrt(sumsq + eps^2) ~= 1 / max(norm, eps)


def _round_up(x, m):
    return ((x + m - 1) // m) * m


def _pick_tile(n, preferred=8192):
    """Largest power-of-two multiple of 128 dividing n, up to `preferred`.
    Falls back to n itself (a full-extent block dim is always legal)."""
    best = None
    t = 128
    while t <= min(n, preferred):
        if n % t == 0:
            best = t
        t *= 2
    return best if best is not None else n


# ----------------------------------------------------------------------------
# Pallas kernels
# ----------------------------------------------------------------------------
def query_kernel(x_ref, wt_ref, sal_ref, q_ref, part_ref, *, dim):
    """Fused query tile: one matmul for both heads (pixels on lanes),
    L2-normalize the embedding (lane-dense bf16 store), and reduce the
    balanced-BCE per-pixel terms to 4 partial sums (one 128-lane row)."""
    x = x_ref[0]                                                     # (C, TP)
    out = jnp.dot(wt_ref[...], x,
                  preferred_element_type=jnp.float32)                # (dim_pad, TP)
    q = out[:dim, :]                                                 # (dim, TP)
    bg = out[dim:dim + 1, :]                                         # (1, TP)

    inv = jax.lax.rsqrt(jnp.sum(q * q, axis=0, keepdims=True) + EPS_SQ)
    q_ref[...] = ((q * inv)[None]).astype(q_ref.dtype)               # (1, dim, TP)

    # Balanced BCE (stable with-logits form), partial sums only.
    sal = sal_ref[0]                                                 # (1, TP)
    labels = (sal >= 0.5).astype(jnp.float32)
    pos_ind = (bg >= 0.0).astype(jnp.float32)
    loss_val = bg * (labels - pos_ind) - jnp.log(
        1.0 + jnp.exp(bg - 2.0 * bg * pos_ind))
    loss_pos = jnp.sum(-labels * loss_val, keepdims=True)            # (1, 1)
    loss_neg = jnp.sum(-(1.0 - labels) * loss_val, keepdims=True)
    num_pos = jnp.sum(labels, keepdims=True)
    num_neg = jnp.sum(1.0 - labels, keepdims=True)

    lane = jax.lax.broadcasted_iota(jnp.int32, (1, 128), 1)
    row = (jnp.where(lane == 0, loss_pos, 0.0)
           + jnp.where(lane == 1, loss_neg, 0.0)
           + jnp.where(lane == 2, num_pos, 0.0)
           + jnp.where(lane == 3, num_neg, 0.0))
    part_ref[...] = row[None, None]                                  # (1,1,1,128)


def key_proto_kernel(x_ref, wt_ref, sal_ref, proto_ref, acc_ref):
    """Fused key branch: encode -> per-pixel normalize -> saliency-weighted
    prototype accumulation (VPU mul + lane reduce) -> prototype normalize."""
    p = pl.program_id(1)

    @pl.when(p == 0)
    def _init():
        acc_ref[...] = jnp.zeros_like(acc_ref)

    x = x_ref[0]                                                     # (C, THW)
    k = jnp.dot(wt_ref[...], x, preferred_element_type=jnp.float32)  # (dim, THW)
    inv = jax.lax.rsqrt(jnp.sum(k * k, axis=0, keepdims=True) + EPS_SQ)
    k = k * inv
    sal = sal_ref[0]                                                 # (1, THW)
    acc_ref[...] += jnp.sum(k * sal, axis=1, keepdims=True)          # (dim, 1)

    @pl.when(p == pl.num_programs(1) - 1)
    def _finalize():
        proto = acc_ref[...]
        inv2 = jax.lax.rsqrt(jnp.sum(proto * proto, axis=0, keepdims=True) + EPS_SQ)
        proto_ref[...] = (proto * inv2)[None]                        # (1, dim, 1)


def logits_kernel(q_ref, rhs_ref, out_ref, *, inv_t):
    """logits tile = (q_sel @ [prototypes^T | queue]) * (1/T)."""
    out_ref[...] = jnp.dot(q_ref[...], rhs_ref[...],
                           preferred_element_type=jnp.float32) * inv_t


# ----------------------------------------------------------------------------
# pallas_call wrappers
# ----------------------------------------------------------------------------
def encode_query(xq, wt_fused, sal_row, dim, tile_p):
    B, C, HW = xq.shape
    assert HW % tile_p == 0
    n_t = HW // tile_p
    q_t, partials = pl.pallas_call(
        functools.partial(query_kernel, dim=dim),
        grid=(B, n_t),
        in_specs=[
            pl.BlockSpec((1, C, tile_p), lambda b, p: (b, 0, p)),
            pl.BlockSpec(wt_fused.shape, lambda b, p: (0, 0)),
            pl.BlockSpec((1, 1, tile_p), lambda b, p: (b, 0, p)),
        ],
        out_specs=[
            pl.BlockSpec((1, dim, tile_p), lambda b, p: (b, 0, p)),
            pl.BlockSpec((1, 1, 1, 128), lambda b, p: (b, p, 0, 0)),
        ],
        out_shape=(
            jax.ShapeDtypeStruct((B, dim, HW), jnp.bfloat16),
            jax.ShapeDtypeStruct((B, n_t, 1, 128), jnp.float32),
        ),
        compiler_params=pltpu.CompilerParams(
            dimension_semantics=("parallel", "parallel")),
    )(xq, wt_fused, sal_row)
    return q_t, partials


def encode_key_prototypes(xk, wt_emb, sal_row, dim, tile_hw):
    B, C, HW = xk.shape
    assert HW % tile_hw == 0
    n_t = HW // tile_hw
    proto = pl.pallas_call(
        key_proto_kernel,
        grid=(B, n_t),
        in_specs=[
            pl.BlockSpec((1, C, tile_hw), lambda b, p: (b, 0, p)),
            pl.BlockSpec(wt_emb.shape, lambda b, p: (0, 0)),
            pl.BlockSpec((1, 1, tile_hw), lambda b, p: (b, 0, p)),
        ],
        out_specs=pl.BlockSpec((1, dim, 1), lambda b, p: (b, 0, 0)),
        out_shape=jax.ShapeDtypeStruct((B, dim, 1), jnp.float32),
        scratch_shapes=[pltpu.VMEM((dim, 1), jnp.float32)],
        compiler_params=pltpu.CompilerParams(
            dimension_semantics=("parallel", "arbitrary")),
    )(xk, wt_emb, sal_row)
    return proto.reshape(B, dim)


def compute_logits(q_sel, rhs, inv_t, tile_m_pref=256, tile_c=128):
    n_sel, dim = q_sel.shape
    n_cols = rhs.shape[1]
    tile_m = tile_m_pref if n_sel >= tile_m_pref else _round_up(n_sel, 8)
    rows_pad = _round_up(n_sel, tile_m)
    cols_pad = _round_up(n_cols, tile_c)
    q_pad = jnp.pad(q_sel, ((0, rows_pad - n_sel), (0, 0)))
    rhs_pad = jnp.pad(rhs, ((0, 0), (0, cols_pad - n_cols)))
    out = pl.pallas_call(
        functools.partial(logits_kernel, inv_t=inv_t),
        grid=(rows_pad // tile_m, cols_pad // tile_c),
        in_specs=[
            pl.BlockSpec((tile_m, dim), lambda i, j: (i, 0)),
            pl.BlockSpec((dim, tile_c), lambda i, j: (0, j)),
        ],
        out_specs=pl.BlockSpec((tile_m, tile_c), lambda i, j: (i, j)),
        out_shape=jax.ShapeDtypeStruct((rows_pad, cols_pad), jnp.float32),
        compiler_params=pltpu.CompilerParams(
            dimension_semantics=("parallel", "parallel")),
    )(q_pad, rhs_pad)
    return out[:n_sel, :n_cols]


# ----------------------------------------------------------------------------
# Glue (parameter bookkeeping, queue mutation, data-dependent gather)
# ----------------------------------------------------------------------------
def momentum_update(params_k, params_q, m):
    return jax.tree_util.tree_map(lambda pk, pq: pk * m + pq * (1.0 - m),
                                  params_k, params_q)


def dequeue_and_enqueue(queue, queue_ptr, keys, K):
    batch_size = keys.shape[0]
    ptr = int(queue_ptr)
    if ptr + batch_size > K:
        diff = ptr + batch_size - K
        queue = queue.at[:, ptr:].set(keys.T[:, :batch_size - diff])
        queue = queue.at[:, :diff].set(keys.T[:, batch_size - diff:])
        ptr = diff
    else:
        queue = queue.at[:, ptr:ptr + batch_size].set(keys.T)
        ptr = (ptr + batch_size) % K
    return queue, ptr


def contrastive_forward(params_q, params_k, queue, queue_ptr,
                        im_q, im_k, sal_q, sal_k, *, m, T, K, dim,
                        tile_p_pref=8192):
    """Mirrors ContrastiveModel.forward (distributed=False)."""
    B, C, H, W = im_q.shape
    HW = H * W
    N = B * HW

    # -------------------------------------------------------------- query side
    xq = im_q.reshape(B, C, HW)                              # free reshape (NCHW kept)
    wt_fused = jnp.concatenate(
        [params_q["w_emb"], params_q["w_bg"]], axis=1).T     # (dim+1, C)
    rows_pad = _round_up(wt_fused.shape[0], 8)
    wt_fused = jnp.pad(wt_fused, ((0, rows_pad - wt_fused.shape[0]), (0, 0)))
    sal_q_row = sal_q.reshape(B, 1, HW).astype(jnp.float32)

    tile_p = _pick_tile(HW, tile_p_pref)
    q_t, bce_part = encode_query(xq, wt_fused, sal_q_row, dim, tile_p)
    # q_t: (B, dim, HW) bf16, pixels on lanes

    # balanced BCE finalize (a handful of scalar flops)
    psum = bce_part.sum(axis=(0, 1, 2))
    loss_pos, loss_neg, num_pos, num_neg = psum[0], psum[1], psum[2], psum[3]
    num_total = num_pos + num_neg
    sal_loss = ((num_neg / num_total) * loss_pos
                + (num_pos / num_total) * loss_neg) / jnp.float32(N)

    # ---------------------------------------------- foreground pixel selection
    # TODO(synk): data-dependent Nsel forces a host sync (torch.nonzero analogue).
    offset = jnp.arange(0, 2 * B, 2, dtype=sal_q.dtype)
    sal_q_t = ((sal_q + offset[:, None, None]) * sal_q).reshape(-1)
    mask_indexes = np.nonzero(np.asarray(sal_q_t))[0]
    sal_q_out = jnp.floor_divide(sal_q_t[mask_indexes], 2.0)

    # ---------------------------------------------------------------- key side
    params_k = momentum_update(params_k, params_q, m)
    xk = im_k.reshape(B, C, HW)
    wt_emb_k = params_k["w_emb"].T                           # (dim, C)
    sal_k_row = sal_k.reshape(B, 1, HW).astype(jnp.float32)
    tile_hw = _pick_tile(HW, tile_p_pref)
    prototypes = encode_key_prototypes(xk, wt_emb_k, sal_k_row, dim, tile_hw)  # (B, dim)

    # ------------------------------------------------------------------ logits
    n_cols = B + K
    n_sel = int(mask_indexes.shape[0])
    if n_sel > 0:
        b_idx = mask_indexes // HW
        p_idx = mask_indexes % HW
        q_sel = q_t[b_idx, :, p_idx]                         # (Nsel, dim) bf16 gather
        rhs = jnp.concatenate([prototypes.T, queue],
                              axis=1).astype(jnp.bfloat16)   # (dim, B+K)
        logits = compute_logits(q_sel, rhs, 1.0 / T)
    else:
        logits = jnp.zeros((0, n_cols), jnp.float32)

    # queue bookkeeping (buffer mutation, no compute)
    queue, queue_ptr = dequeue_and_enqueue(queue, queue_ptr, prototypes, K)

    return logits, sal_q_out, sal_loss, params_k, queue, queue_ptr


# ----------------------------------------------------------------------------
if __name__ == "__main__":
    B, C, H, W = 2, 3, 16, 16
    DIM, K, M, T = 32, 64, 0.999, 0.07

    key = jax.random.PRNGKey(0)
    k1, k2, k3, k4, k5, k6, k7 = jax.random.split(key, 7)

    im_q = jax.random.normal(k1, (B, C, H, W), jnp.float32)
    im_k = jax.random.normal(k2, (B, C, H, W), jnp.float32)
    sal_q = (jax.random.uniform(k3, (B, H, W)) > 0.5).astype(jnp.float32)
    sal_k = (jax.random.uniform(k4, (B, H, W)) > 0.5).astype(jnp.float32)

    # synthetic 1x1-conv encoder parameters (model_k copies model_q)
    params_q = {
        "w_emb": jax.random.normal(k5, (C, DIM), jnp.float32) * 0.1,
        "w_bg": jax.random.normal(k6, (C, 1), jnp.float32) * 0.1,
    }
    params_k = jax.tree_util.tree_map(lambda x: x, params_q)

    # queue buffer: randn(dim, K) normalized along dim=0
    queue = jax.random.normal(k7, (DIM, K), jnp.float32)
    queue = queue / jnp.maximum(
        jnp.sqrt(jnp.sum(queue * queue, axis=0, keepdims=True)), EPS)
    queue_ptr = 0

    queue0 = queue
    params_k0 = params_k

    logits, sal_q_out, sal_loss, params_k, queue, queue_ptr = contrastive_forward(
        params_q, params_k, queue, queue_ptr, im_q, im_k, sal_q, sal_k,
        m=M, T=T, K=K, dim=DIM)

    jax.block_until_ready((logits, sal_q_out, sal_loss, queue))

    # ---- pure-JAX reference (mirrors the PyTorch forward) ----
    mm = functools.partial(jnp.matmul, precision=jax.lax.Precision.HIGHEST)

    def _norm(x):
        n = jnp.sqrt(jnp.sum(x * x, axis=-1, keepdims=True))
        return x / jnp.maximum(n, EPS)

    xq_r = jnp.transpose(im_q, (0, 2, 3, 1)).reshape(-1, C)
    q_r = _norm(mm(xq_r, params_q["w_emb"]))
    bg_r = mm(xq_r, params_q["w_bg"]).reshape(B, H, W)
    lbl = (sal_q >= 0.5).astype(jnp.float32)
    npos, nneg = lbl.sum(), (1.0 - lbl).sum()
    ind = (bg_r >= 0.0).astype(jnp.float32)
    lv = bg_r * (lbl - ind) - jnp.log(1.0 + jnp.exp(bg_r - 2.0 * bg_r * ind))
    lp, ln = (-lbl * lv).sum(), (-(1.0 - lbl) * lv).sum()
    sal_loss_r = ((nneg / (npos + nneg)) * lp
                  + (npos / (npos + nneg)) * ln) / (B * H * W)

    pk_r = jax.tree_util.tree_map(lambda a, b: a * M + b * (1.0 - M),
                                  params_k0, params_q)
    xk_r = jnp.transpose(im_k, (0, 2, 3, 1)).reshape(-1, C)
    k_r = _norm(mm(xk_r, pk_r["w_emb"])).reshape(B, H * W, DIM)
    proto_r = _norm(jnp.sum(k_r * sal_k.reshape(B, H * W, 1), axis=1))

    off = jnp.arange(0, 2 * B, 2, dtype=sal_q.dtype)
    midx = np.nonzero(np.asarray(((sal_q + off[:, None, None]) * sal_q).reshape(-1)))[0]
    logits_r = jnp.concatenate(
        [mm(q_r[midx], proto_r.T), mm(q_r[midx], queue0)], axis=1) / T

    np.testing.assert_allclose(np.asarray(sal_loss), np.asarray(sal_loss_r),
                               rtol=1e-2, atol=1e-2)
    np.testing.assert_allclose(np.asarray(logits), np.asarray(logits_r),
                               rtol=5e-2, atol=5e-2)
    assert logits.shape == (midx.shape[0], B + K)
    assert sal_q_out.shape[0] == logits.shape[0]
    print("KERNEL_OK")
</pallas_src>

<mosaic_0001>
module attributes {stable_mosaic.version = 11 : i64} {
  func.func @query_kernel(%arg0: i32, %arg1: i32, %arg2: memref<1x3x256xf32, #tpu.memory_space<vmem>>, %arg3: memref<40x3xf32, #tpu.memory_space<vmem>>, %arg4: memref<1x1x256xf32, #tpu.memory_space<vmem>>, %arg5: memref<1x32x256xbf16, #tpu.memory_space<vmem>>, %arg6: memref<1x1x1x128xf32, #tpu.memory_space<vmem>>) attributes {dimension_semantics = [#tpu.dimension_semantics<parallel>, #tpu.dimension_semantics<parallel>], iteration_bounds = array<i64: 2, 1>, scalar_prefetch = 0 : i64, scratch_operands = 0 : i64, tpu.core_type = #tpu.core_type<tc>, window_params = [{transform_indices = @transform_0, window_bounds = array<i64: 1, 3, 256>}, {pipeline_mode = #tpu.pipeline_mode<synchronous>, transform_indices = @transform_1, window_bounds = array<i64: 40, 3>}, {transform_indices = @transform_2, window_bounds = array<i64: 1, 1, 256>}, {transform_indices = @transform_3, window_bounds = array<i64: 1, 32, 256>}, {transform_indices = @transform_4, window_bounds = array<i64: 1, 1, 1, 128>}]} {
    %c0 = arith.constant 0 : index
    %c0_0 = arith.constant 0 : index
    %c0_1 = arith.constant 0 : index
    %0 = vector.load %arg2[%c0, %c0_0, %c0_1] : memref<1x3x256xf32, #tpu.memory_space<vmem>>, vector<1x3x256xf32>
    %1 = vector.shape_cast %0 : vector<1x3x256xf32> to vector<3x256xf32>
    %c0_2 = arith.constant 0 : index
    %c0_3 = arith.constant 0 : index
    %2 = vector.load %arg3[%c0_2, %c0_3] : memref<40x3xf32, #tpu.memory_space<vmem>>, vector<40x3xf32>
    %cst = arith.constant dense<0.000000e+00> : vector<40x256xf32>
    %3 = tpu.matmul %2, %1, %cst {dimension_numbers = #tpu.dot_dimension_numbers<[1], [0], [0], [1], [0, 0, 1, 1], [], []>} : vector<40x3xf32>, vector<3x256xf32>, vector<40x256xf32> -> vector<40x256xf32>
    %4 = vector.extract_strided_slice %3 {offsets = [0, 0], sizes = [32, 256], strides = [1, 1]} : vector<40x256xf32> to vector<32x256xf32>
    %5 = vector.extract_strided_slice %3 {offsets = [32, 0], sizes = [1, 256], strides = [1, 1]} : vector<40x256xf32> to vector<1x256xf32>
    %6 = arith.mulf %4, %4 : vector<32x256xf32>
    %cst_4 = arith.constant dense<0.000000e+00> : vector<256xf32>
    %7 = vector.multi_reduction <add>, %6, %cst_4 [0] : vector<32x256xf32> to vector<256xf32>
    %8 = vector.shape_cast %7 : vector<256xf32> to vector<1x256xf32>
    %cst_5 = arith.constant 1.000000e-24 : f32
    %9 = vector.broadcast %cst_5 : f32 to vector<1x256xf32>
    %10 = arith.addf %8, %9 : vector<1x256xf32>
    %11 = math.rsqrt %10 : vector<1x256xf32>
    %12 = vector.broadcast %11 : vector<1x256xf32> to vector<32x256xf32>
    %13 = arith.mulf %4, %12 : vector<32x256xf32>
    %14 = vector.shape_cast %13 : vector<32x256xf32> to vector<1x32x256xf32>
    %15 = arith.truncf %14 : vector<1x32x256xf32> to vector<1x32x256xbf16>
    %c0_6 = arith.constant 0 : index
    %c0_7 = arith.constant 0 : index
    %c0_8 = arith.constant 0 : index
    %16 = vector.load %arg5[%c0_6, %c0_7, %c0_8] : memref<1x32x256xbf16, #tpu.memory_space<vmem>>, vector<1x32x256xbf16>
    tpu.vector_store %arg5[%c0_6, %c0_7, %c0_8], %15 {strides = array<i32>} : memref<1x32x256xbf16, #tpu.memory_space<vmem>>, vector<1x32x256xbf16>,
    %c0_9 = arith.constant 0 : index
    %c0_10 = arith.constant 0 : index
    %c0_11 = arith.constant 0 : index
    %17 = vector.load %arg4[%c0_9, %c0_10, %c0_11] : memref<1x1x256xf32, #tpu.memory_space<vmem>>, vector<1x1x256xf32>
    %18 = vector.shape_cast %17 : vector<1x1x256xf32> to vector<1x256xf32>
    %cst_12 = arith.constant 5.000000e-01 : f32
    %19 = vector.broadcast %cst_12 : f32 to vector<1x256xf32>
    %20 = arith.cmpf oge, %18, %19 : vector<1x256xf32>
    %21 = arith.extui %20 : vector<1x256xi1> to vector<1x256xi32>
    %22 = arith.sitofp %21 : vector<1x256xi32> to vector<1x256xf32>
    %cst_13 = arith.constant 0.000000e+00 : f32
    %23 = vector.broadcast %cst_13 : f32 to vector<1x256xf32>
    %24 = arith.cmpf oge, %5, %23 : vector<1x256xf32>
    %25 = arith.extui %24 : vector<1x256xi1> to vector<1x256xi32>
    %26 = arith.sitofp %25 : vector<1x256xi32> to vector<1x256xf32>
    %27 = arith.subf %22, %26 : vector<1x256xf32>
    %28 = arith.mulf %5, %27 : vector<1x256xf32>
    %cst_14 = arith.constant 2.000000e+00 : f32
    %29 = vector.broadcast %cst_14 : f32 to vector<1x256xf32>
    %30 = arith.mulf %29, %5 : vector<1x256xf32>
    %31 = arith.mulf %30, %26 : vector<1x256xf32>
    %32 = arith.subf %5, %31 : vector<1x256xf32>
    %33 = math.exp %32 : vector<1x256xf32>
    %cst_15 = arith.constant 1.000000e+00 : f32
    %34 = vector.broadcast %cst_15 : f32 to vector<1x256xf32>
    %35 = arith.addf %34, %33 : vector<1x256xf32>
    %36 = math.log %35 : vector<1x256xf32>
    %37 = arith.subf %28, %36 : vector<1x256xf32>
    %cst_16 = arith.constant 0.000000e+00 : f32
    %38 = vector.broadcast %cst_16 : f32 to vector<1x256xf32>
    %39 = arith.subf %38, %22 : vector<1x256xf32>
    %40 = arith.mulf %39, %37 : vector<1x256xf32>
    %41 = vector.shape_cast %40 : vector<1x256xf32> to vector<1x1x256xf32>
    %cst_17 = arith.constant dense<0.000000e+00> : vector<1xf32>
    %42 = vector.multi_reduction <add>, %41, %cst_17 [1, 2] : vector<1x1x256xf32> to vector<1xf32>
    %43 = vector.shape_cast %42 : vector<1xf32> to vector<1x1x1xf32>
    %44 = vector.extract %43[0, 0, 0] : f32 from vector<1x1x1xf32>
    %45 = vector.broadcast %44 : f32 to vector<1x1xf32>
    %cst_18 = arith.constant 1.000000e+00 : f32
    %46 = vector.broadcast %cst_18 : f32 to vector<1x256xf32>
    %47 = arith.subf %46, %22 : vector<1x256xf32>
    %cst_19 = arith.constant 0.000000e+00 : f32
    %48 = vector.broadcast %cst_19 : f32 to vector<1x256xf32>
    %49 = arith.subf %48, %47 : vector<1x256xf32>
    %50 = arith.mulf %49, %37 : vector<1x256xf32>
    %51 = vector.shape_cast %50 : vector<1x256xf32> to vector<1x1x256xf32>
    %cst_20 = arith.constant dense<0.000000e+00> : vector<1xf32>
    %52 = vector.multi_reduction <add>, %51, %cst_20 [1, 2] : vector<1x1x256xf32> to vector<1xf32>
    %53 = vector.shape_cast %52 : vector<1xf32> to vector<1x1x1xf32>
    %54 = vector.extract %53[0, 0, 0] : f32 from vector<1x1x1xf32>
    %55 = vector.broadcast %54 : f32 to vector<1x1xf32>
    %56 = vector.shape_cast %22 : vector<1x256xf32> to vector<1x1x256xf32>
    %cst_21 = arith.constant dense<0.000000e+00> : vector<1xf32>
    %57 = vector.multi_reduction <add>, %56, %cst_21 [1, 2] : vector<1x1x256xf32> to vector<1xf32>
    %58 = vector.shape_cast %57 : vector<1xf32> to vector<1x1x1xf32>
    %59 = vector.extract %58[0, 0, 0] : f32 from vector<1x1x1xf32>
    %60 = vector.broadcast %59 : f32 to vector<1x1xf32>
    %cst_22 = arith.constant 1.000000e+00 : f32
    %61 = vector.broadcast %cst_22 : f32 to vector<1x256xf32>
    %62 = arith.subf %61, %22 : vector<1x256xf32>
    %63 = vector.shape_cast %62 : vector<1x256xf32> to vector<1x1x256xf32>
    %cst_23 = arith.constant dense<0.000000e+00> : vector<1xf32>
    %64 = vector.multi_reduction <add>, %63, %cst_23 [1, 2] : vector<1x1x256xf32> to vector<1xf32>
    %65 = vector.shape_cast %64 : vector<1xf32> to vector<1x1x1xf32>
    %66 = vector.extract %65[0, 0, 0] : f32 from vector<1x1x1xf32>
    %67 = vector.broadcast %66 : f32 to vector<1x1xf32>
    %68 = tpu.iota {dimensions = array<i32: 1>} : vector<1x128xi32>
    %c0_i32 = arith.constant 0 : i32
    %69 = vector.broadcast %c0_i32 : i32 to vector<1x128xi32>
    %70 = arith.cmpi eq, %68, %69 : vector<1x128xi32>
    %cst_24 = arith.constant 0.000000e+00 : f32
    %71 = vector.shape_cast %45 : vector<1x1xf32> to vector<1x1xf32>
    %72 = vector.broadcast %71 : vector<1x1xf32> to vector<1x128xf32>
    %73 = vector.broadcast %cst_24 : f32 to vector<1x128xf32>
    %74 = arith.select %70, %72, %73 : vector<1x128xi1>, vector<1x128xf32>
    %c1_i32 = arith.constant 1 : i32
    %75 = vector.broadcast %c1_i32 : i32 to vector<1x128xi32>
    %76 = arith.cmpi eq, %68, %75 : vector<1x128xi32>
    %cst_25 = arith.constant 0.000000e+00 : f32
    %77 = vector.shape_cast %55 : vector<1x1xf32> to vector<1x1xf32>
    %78 = vector.broadcast %77 : vector<1x1xf32> to vector<1x128xf32>
    %79 = vector.broadcast %cst_25 : f32 to vector<1x128xf32>
    %80 = arith.select %76, %78, %79 : vector<1x128xi1>, vector<1x128xf32>
    %81 = arith.addf %74, %80 : vector<1x128xf32>
    %c2_i32 = arith.constant 2 : i32
    %82 = vector.broadcast %c2_i32 : i32 to vector<1x128xi32>
    %83 = arith.cmpi eq, %68, %82 : vector<1x128xi32>
    %cst_26 = arith.constant 0.000000e+00 : f32
    %84 = vector.shape_cast %60 : vector<1x1xf32> to vector<1x1xf32>
    %85 = vector.broadcast %84 : vector<1x1xf32> to vector<1x128xf32>
    %86 = vector.broadcast %cst_26 : f32 to vector<1x128xf32>
    %87 = arith.select %83, %85, %86 : vector<1x128xi1>, vector<1x128xf32>
    %88 = arith.addf %81, %87 : vector<1x128xf32>
    %c3_i32 = arith.constant 3 : i32
    %89 = vector.broadcast %c3_i32 : i32 to vector<1x128xi32>
    %90 = arith.cmpi eq, %68, %89 : vector<1x128xi32>
    %cst_27 = arith.constant 0.000000e+00 : f32
    %91 = vector.shape_cast %67 : vector<1x1xf32> to vector<1x1xf32>
    %92 = vector.broadcast %91 : vector<1x1xf32> to vector<1x128xf32>
    %93 = vector.broadcast %cst_27 : f32 to vector<1x128xf32>
    %94 = arith.select %90, %92, %93 : vector<1x128xi1>, vector<1x128xf32>
    %95 = arith.addf %88, %94 : vector<1x128xf32>
    %96 = vector.shape_cast %95 : vector<1x128xf32> to vector<1x1x1x128xf32>
    %c0_28 = arith.constant 0 : index
    %c0_29 = arith.constant 0 : index
    %c0_30 = arith.constant 0 : index
    %c0_31 = arith.constant 0 : index
    %97 = vector.load %arg6[%c0_28, %c0_29, %c0_30, %c0_31] : memref<1x1x1x128xf32, #tpu.memory_space<vmem>>, vector<1x1x1x128xf32>
    tpu.vector_store %arg6[%c0_28, %c0_29, %c0_30, %c0_31], %96 {strides = array<i32>} : memref<1x1x1x128xf32, #tpu.memory_space<vmem>>, vector<1x1x1x128xf32>,
    return
  }
  func.func @transform_0(%arg0: i32, %arg1: i32) -> (i32, i32, i32) {
    %c0_i32 = arith.constant 0 : i32
    %c0_i32_0 = arith.constant 0 : i32
    return %arg0, %c0_i32, %arg1 : i32, i32, i32
  }
  func.func @transform_1(%arg0: i32, %arg1: i32) -> (i32, i32) {
    %c0_i32 = arith.constant 0 : i32
    %c0_i32_0 = arith.constant 0 : i32
    %c0_i32_1 = arith.constant 0 : i32
    return %c0_i32, %c0_i32_0 : i32, i32
  }
  func.func @transform_2(%arg0: i32, %arg1: i32) -> (i32, i32, i32) {
    %c0_i32 = arith.constant 0 : i32
    %c0_i32_0 = arith.constant 0 : i32
    return %arg0, %c0_i32, %arg1 : i32, i32, i32
  }
  func.func @transform_3(%arg0: i32, %arg1: i32) -> (i32, i32, i32) {
    %c0_i32 = arith.constant 0 : i32
    %c0_i32_0 = arith.constant 0 : i32
    return %arg0, %c0_i32, %arg1 : i32, i32, i32
  }
  func.func @transform_4(%arg0: i32, %arg1: i32) -> (i32, i32, i32, i32) {
    %c0_i32 = arith.constant 0 : i32
    %c0_i32_0 = arith.constant 0 : i32
    %c0_i32_1 = arith.constant 0 : i32
    return %arg0, %arg1, %c0_i32, %c0_i32_0 : i32, i32, i32, i32
  }
}

</mosaic_0001>

<bundles_post_ra>
// kernel: tpu_custom_call.1
= control target key start
LH: loop header
LB: loop body
LE: loop exit
PB: predicated region body
PF: predicated region fallthrough
CT: control target
= control target key end

     0   :  { %10 = vsyncpa [#allocation3], 0  ;;  %s1330_s0 = inlined_call_operand.vmem [shape: f32[2,3,256], index: 0, kind: input, shape index: {}]   ;;  %s1331_s1 = inlined_call_operand.vmem [shape: f32[40,3], index: 1, kind: input, shape index: {}]   ;;  %s1332_s2 = inlined_call_operand.vmem [shape: f32[2,1,256], index: 2, kind: input, shape index: {}]   ;;  %s1333_s3 = inlined_call_operand.hbm [shape: bf16[2,32,256], index: 3, kind: output, shape index: {0}]   ;;  %s1334_s4 = inlined_call_operand.hbm [shape: f32[2,1,1,128], index: 4, kind: output, shape index: {1}]  }
   0x1   :  { %12 = vsyncpa [#allocation3 + $0x1], 0 }
   0x2   :  { %13 = vsyncpa [#allocation5], 0 }
   0x3   :  { %15 = vsyncpa [#allocation5 + $0x1], 0  ;;  %s1078_s15 = smov 0   ;;  %s1080_s16 = smov 0  }
   0x4   :  { %s1082_s17 = smov 0   ;;  %s1084_s18 = smov 0  }
   0x5   :  { %s1086_s19 = smov 0   ;;  %s1088_s20 = smov 0  }
   0x6 LB: > { %s813_s21 = sadd.s32 4294967295, %s1045_s20   ;;  %s814_s22 = sadd.s32 4294967294, %s1045_s20   ;;  %s1045_s20 = sphi %s1088_s20, %s21_s20   ;;  %s1041_s19 = sphi %s1086_s19, %s1341_s19   ;;  %s1037_s18 = sphi %s1084_s18, %s1340_s18   ;;  %s1033_s17 = sphi %s1082_s17, %s1339_s17   ;;  %s1029_s16 = sphi %s1080_s16, %s1338_s16   ;;  %s1025_s15 = sphi %s1078_s15, %s1337_s15  }
   0x7   : > { %s33_s23 = sadd.s32 1, %s1041_s19  ;;  %s119_s24 = sadd.s32 1, %s1033_s17 }
   0x8   : > { %p35_p0 = scmp.ge.s32.totalorder %s33_s23, 2  ;;  %p129_p1 = scmp.ne.s32.totalorder %s1033_s17, %s1029_s16 }
   0x9   : > { %p130_p2 = scmp.eq.s32.totalorder %s813_s21, 1  ;;  %p135_p3 = scmp.ne.s32.totalorder %s1029_s16, %s1025_s15 }
   0xa   : > { %s1343_s23 = smov (%p35_p0, %s33_s23), 0  ;;  %p136_p5 = scmp.eq.s32.totalorder %s814_s22, 1 }
   0xb   : > { %p1118_p4 = por %p130_p2, %p129_p1  ;;  %s114_s26 = ssub.s32 %s1041_s19, %s1343_s23 }
   0xc   : > { %p817_p6 = scmp.ge.s32.totalorder %s1045_s20, 1  ;;  %p117_p7 = scmp.eq.s32.totalorder %s114_s26, 0 }
   0xd   : > { %p1125_p8 = por %p136_p5, %p135_p3  ;;  %p210_p9 = scmp.lt.s32.totalorder %s1045_s20, 3 }
   0xe   : > { %s1131_s28 = scalar_select %p117_p7, %s1033_s17, %s119_s24  }
   0xf   : > { %p211_p10 = pnand %p817_p6, %p210_p9 }
  0x10   : > { %p253_p11 = scmp.lt.s32.totalorder (!%p211_p10), %s1037_s18, 1  ;;  %v1047_v0 = vmov (!%p211_p10), 0.0   ;;  %vm296_vm0 = vcmask (!%p211_p10), 1042432   ;;  %v273_v3 = vld [vmem:[%s1331_s1] sm:$0xff] (!%p211_p10)  ;;  %vm280_vm1 = vcmask (!%p211_p10), 23552   ;;  %v276_v4 = vld [vmem:[%s1331_s1 + $0x18] sm:$0xff] (!%p211_p10)  ;;  %v478_v8 = vlaneseq (!%p211_p10) }
  0x11   : > { %214 = sbr.rel (%p211_p10) target bundleno = 529 (0x211), region = 32  ;;  %365 = vmatprep.mubr.f32.mxu0 (!%p211_p10), %v1047_v0  ;;  %383 = vmatprep.mubr.f32.mxu1 (!%p211_p10), %v1047_v0  ;;  %v274_v5 = vld [vmem:[%s1331_s1 + $0x8] sm:$0xff] (!%p211_p10)  ;;  %v277_v6 = vld [vmem:[%s1331_s1 + $0x20] sm:$0xff] (!%p211_p10)  ;;  %v275_v7 = vld [vmem:[%s1331_s1 + $0x10] sm:$0xff] (!%p211_p10)  ;;  %vm553_vm3 = vcmask (!%p211_p10), 1040384   ;;  %s847_s10 = sshll.u32 (!%p211_p10), %s1037_s18, 9 }
  0x12   : > { %v479_v10 = vshrl.u32 (!%p211_p10), %v478_v8, 7  ;;  %v1048_v25 = vmov (!%p211_p10), 1966171168   ;;  %s1250_s13 = scalar_lea.hbm (!%p211_p10), %s1333_s3, %s847_s10  ;;  %s1049_s22 = smov (!%p211_p10), [#allocation2]  }
  0x13   : > { %v476_v26 = vunpack.c.l.s4 (!%p211_p10), %v1048_v25  ;;  %s939_s24 = sshll.u32 (!%p211_p10), %s1049_s22, 4  ;;  %s940_s24 = int_to_ptr.vmem [resolvable:$false] %s939_s24 }
  0x14   : > { %v1167_v11 = vsub.s32 (!%p211_p10), 0, %v479_v10  ;;  %v1169_v12 = vsub.s32 (!%p211_p10), 1, %v479_v10 }
  0x15   : > { %v477_v31 = vunpack.c.0.s8 (!%p211_p10), %v476_v26 }
  0x17   : > { %v1203_v38 = vsub.s32 (!%p211_p10), %v477_v31, %v479_v10 }
  0x18   : > { %s254_s29 = scalar_select %p253_p11, %s1037_s18, 1 }
  0x1a   : > { %s842_s30 = sshll.u32 %s254_s29, 3  ;;  %s821_s26 = sshll.u32 %s254_s29, 1 }
  0x1b   : > { %s260_s7 = scalar_lea.vmem %s1330_s0, %s842_s30  ;;  %s269_s6 = scalar_lea.vmem %s1332_s2, %s821_s26 }
  0x1c   : > { %v272_v1 = vld [vmem:[%s260_s7] sm:$0x77]  ;;  %s1223_s29 = sand.u32 1, %s1029_s16   ;;  %s941_s26 = scalar_lea.vmem %s940_s24, 1024 }
  0x1d   : > { %v279_v2 = vcombine.high %v272_v1, %v272_v1  ;;  %v462_v9 = vld [vmem:[%s269_s6] sm:$0x3]  ;;  %s818_s7 = sshll.u32 %s1223_s29, 5  ;;  %s657_s14 = scalar_lea.sflag [#allocation3], %s1223_s29 }
  0x1e   : > { %vm463_vm2 = vcmp.ge.f32.partialorder %v462_v9, 0.5  ;;  %s245_s8 = scalar_lea.vmem [#allocation2], %s818_s7 }
  0x1f   : > { %822 = vmatprep.subr.msk.mxu0 %vm296_vm0, %v279_v2  ;;  %848 = vmatprep.subr.msk.mxu1 %vm296_vm0, %v279_v2  ;;  %v1172_v13 = vsel %vm463_vm2, 1.0, %v1047_v0  ;;  %s676_s9 = sshll.u32 %s245_s8, 4  ;;  %s1244_s9 = int_to_ptr.vmem [resolvable:$true] %s676_s9 }
  0x20   : > { %823 = vmatpush1.msk.msra.mxu0 %vm296_vm0, %v272_v1  ;;  %849 = vmatpush1.msk.msra.mxu1 %vm296_vm0, %v272_v1  ;;  %v596_v14 = vrot.slane %v1172_v13, %v1167_v11  ;;  %v600_v15 = vrot.slane %v1172_v13, %v1169_v12  ;;  %v1181_v19 = vsub.f32 1.0, %v1172_v13  ;;  %s935_s21 = scalar_lea.vmem %s1244_s9, 512  ;;  %p942_p1 = scmp.lt.s32.totalorder %s1244_s9, %s940_s24 }
  0x21   : > { %824 = vmatmul.mubr.msk.f32.vlgmr.msra.gmra.mrb[0].mxu0 %vm280_vm1, %v273_v3  ;;  %827 = vmatmul.mubr.msk.f32.vlgmr.msra.gmra.mrb[0].mxu1 %vm280_vm1, %v276_v4  ;;  %p936_p12 = scmp.ne.s32.totalorder %s1244_s9, %s935_s21  ;;  %p943_p2 = scmp.lt.s32.totalorder %s941_s26, %s935_s21 }
  0x22   : > { %371 = vmatprep.mubr.f32.mxu0 %v1047_v0  ;;  %389 = vmatprep.mubr.f32.mxu1 %v1047_v0  ;;  %v603_v16 = vsel %vm553_vm3, %v596_v14, 0.0  ;;  %v604_v17 = vsel %vm553_vm3, %v600_v15, 0.0  ;;  %v619_v20 = vrot.slane %v1181_v19, %v1167_v11  ;;  %v623_v21 = vrot.slane %v1181_v19, %v1169_v12 }
  0x23   : > { %v605_v18 = vadd.f32 %v604_v17, %v603_v16  ;;  %p937_p13 = pnand %p936_p12, %p1118_p4  ;;  %p944_p3 = por %p943_p2, %p942_p1 }
  0x24   : > { %v626_v22 = vsel %vm553_vm3, %v619_v20, 0.0  ;;  %v627_v23 = vsel %vm553_vm3, %v623_v21, 0.0 }
  0x25   : > { %825 = vmatmul.mubr.msk.f32.gmra.mrb[2].mxu0 %vm280_vm1, %v274_v5  ;;  %828 = vmatmul.mubr.msk.f32.gmra.mrb[2].mxu1 %vm280_vm1, %v277_v6  ;;  %v628_v24 = vadd.f32 %v627_v23, %v626_v22  ;;  %p938_p0 = pneg %p937_p13 }
  0x26   : > { %377 = vmatprep.mubr.f32.mxu0 %v1047_v0  ;;  %606 = vadd.xlane.f32.xlu1 %v605_v18 }
  0x27   : > { %p945_p5 = pnand %p944_p3, %p938_p0 }
  0x29   : > { %826 = vmatmul.mubr.msk.f32.gmra.mrb[4].mxu0 %vm280_vm1, %v275_v7 }
  0x2a   : > { %629 = vadd.xlane.f32.xlu1 %v628_v24 }
  0xf4   : > { %v1189_v27 = vpop.f32.mrb[0].mxu1  ;;  %v1191_v28 = vpop.f32.mrb[0].mxu0 }
  0xf5   : > { %v1193_v29 = vpop.f32.mrb[1].mxu1  ;;  %v1195_v30 = vpop.f32.mrb[1].mxu0  ;;  %v396_v32 = vmul.f32 %v1191_v28, %v1191_v28  ;;  %v402_v57 = vmul.f32 %v1189_v27, %v1189_v27 }
  0xf6   : > { %v397_v34 = vmul.f32 %v1195_v30, %v1195_v30  ;;  %v403_v60 = vmul.f32 %v1193_v29, %v1193_v29 }
  0xf8   : > { %v391_v33 = vpop.f32.mrb[2].mxu1  ;;  %v1201_v35 = vpop.f32.mrb[2].mxu0 }
  0xf9   : > { %vm466_vm4 = vcmp.ge.f32.partialorder %v391_v33, 0.0  ;;  %v504_v36 = vmul.f32 2.0, %v391_v33  ;;  %v393_v37 = vpop.f32.mrb[3].mxu1  ;;  %v398_v39 = vmul.f32 %v1201_v35, %v1201_v35  ;;  %v1207_v40 = vpop.f32.mrb[3].mxu0 }
  0xfa   : > { %v834_v41 = vsel %vm466_vm4, 1.0, %v1047_v0  ;;  %vm467_vm5 = vcmp.ge.f32.partialorder %v393_v37, 0.0  ;;  %v505_v42 = vmul.f32 2.0, %v393_v37  ;;  %v399_v43 = vmul.f32 %v1207_v40, %v1207_v40 }
  0xfb   : > { %v506_v44 = vmul.f32 %v834_v41, %v504_v36  ;;  %v835_v45 = vsel %vm467_vm5, 1.0, %v1047_v0  ;;  %v404_v46 = vadd.f32 %v398_v39, %v396_v32 }
  0xfc   : > { %v474_v47 = vcombine.low %v834_v41, %v835_v45  ;;  %v507_v48 = vmul.f32 %v835_v45, %v505_v42  ;;  %v413_v49 = vadd.f32 %v399_v43, %v397_v34  ;;  %v379_v50 = vpop.f32.mrb[4].mxu0 }
  0xfd   : > { %v508_v51 = vsub.f32 %v391_v33, %v506_v44  ;;  %v400_v52 = vmul.f32 %v379_v50, %v379_v50  ;;  %v381_v53 = vpop.f32.mrb[5].mxu0 }
  0xfe   : > { %v481_v54 = vrot.slane %v474_v47, %v1203_v38  ;;  %v509_v55 = vsub.f32 %v393_v37, %v507_v48  ;;  %v401_v56 = vmul.f32 %v381_v53, %v381_v53 }
  0xff   : > { %v510_v58 = vmul.f32 1.442695, %v508_v51  ;;  %v405_v59 = vadd.f32 %v404_v46, %v400_v52 }
 0x100   : > { %v488_v61 = vrot.slane %v481_v54, %v1203_v38  ;;  %v512_v62 = vmul.f32 1.442695, %v509_v55  ;;  %v414_v63 = vadd.f32 %v413_v49, %v401_v56 }
 0x101   : > { %923 = vpow2.f32 %v510_v58  ;;  %v406_v0 = vadd.f32 %v405_v59, %v402_v57 }
 0x102   : > { %v490_v1 = vsub.f32 %v1172_v13, %v488_v61  ;;  %925 = vpow2.f32 %v512_v62  ;;  %v415_v2 = vadd.f32 %v414_v63, %v403_v60 }
 0x103   : > { %v407_v3 = vrot.slane %v406_v0, 4 }
 0x104   : > { %v495_v4 = vrot.slane %v490_v1, %v1167_v11  ;;  %v499_v5 = vrot.slane %v490_v1, %v1169_v12  ;;  %v416_v6 = vrot.slane %v415_v2, 4 }
 0x105   : > { %v408_v7 = vadd.f32 %v407_v3, %v406_v0 }
 0x106   : > { %v502_v9 = vmul.f32 %v495_v4, %v391_v33  ;;  %v503_v10 = vmul.f32 %v499_v5, %v393_v37  ;;  %v417_v14 = vadd.f32 %v416_v6, %v415_v2 }
 0x107   : > { %v409_v15 = vrot.slane %v408_v7, 2 }
 0x108   : > { %v418_v16 = vrot.slane %v417_v14, 2 }
 0x109   : > { %v410_v17 = vadd.f32 %v409_v15, %v408_v7 }
 0x10a   : > { %v419_v18 = vadd.f32 %v418_v16, %v417_v14 }
 0x10b   : > { %v924_v20 = vpop.eup %923  ;;  %v411_v21 = vrot.slane %v410_v17, 1 }
 0x10c   : > { %v926_v22 = vpop.eup %925  ;;  %v514_v23 = vadd.f32 1.0, %v924_v20  ;;  %v420_v24 = vrot.slane %v419_v18, 1 }
 0x10d   : > { %v515_v25 = vadd.f32 1.0, %v926_v22  ;;  %v412_v26 = vadd.f32 %v411_v21, %v410_v17 }
 0x10e   : > { %927 = vlog2.f32 %v514_v23  ;;  %v421_v31 = vadd.f32 %v420_v24, %v419_v18 }
 0x10f   : > { %929 = vlog2.f32 %v515_v25  ;;  %v422_v32 = vadd.f32 1e-24, %v412_v26 }
 0x110   : > { %v423_v34 = vadd.f32 1e-24, %v421_v31 }
 0x111   : > { %931 = vrsqrt.f32 %v422_v32 }
 0x112   : > { %933 = vrsqrt.f32 %v423_v34 }
 0x118   : > { %v928_v33 = vpop.eup %927 }
 0x119   : > { %v930_v36 = vpop.eup %929  ;;  %v517_v37 = vmul.f32 0.6931472, %v928_v33 }
 0x11a   : > { %v519_v39 = vmul.f32 0.6931472, %v930_v36 }
 0x11b   : > { %v932_v41 = vpop.eup %931  ;;  %v520_v42 = vsub.f32 %v502_v9, %v517_v37 }
 0x11c   : > { %v934_v43 = vpop.eup %933  ;;  %v521_v44 = vsub.f32 %v503_v10, %v519_v39  ;;  %v430_v45 = vmul.f32 %v932_v41, %v379_v50  ;;  %v426_v46 = vmul.f32 %v932_v41, %v1191_v28  ;;  %v428_v47 = vmul.f32 %v932_v41, %v1201_v35 }
 0x11d   : > { %v427_v48 = vmul.f32 %v934_v43, %v1195_v30  ;;  %v429_v49 = vmul.f32 %v934_v43, %v1207_v40  ;;  %v431_v51 = vmul.f32 %v934_v43, %v381_v53  ;;  %v432_v52 = vmul.f32 %v932_v41, %v1189_v27 }
 0x11e   : > { %v525_v54 = vcombine.low %v520_v42, %v521_v44  ;;  %v433_v55 = vmul.f32 %v934_v43, %v1193_v29  ;;  %v522_v50 = vsub.f32 0.0, %v1172_v13  ;;  %v567_v35 = vsub.f32 0.0, %v1181_v19 }
 0x11f   : > { %v843_v56 = vpack.c.bf16 %v427_v48, %v426_v46  ;;  %v844_v57 = vpack.c.bf16 %v429_v49, %v428_v47  ;;  %v845_v58 = vpack.c.bf16 %v431_v51, %v430_v45 }
 0x120   : > { %v846_v59 = vpack.c.bf16 %v433_v55, %v432_v52  ;;  %v532_v28 = vrot.slane %v525_v54, %v1203_v38 }
 0x121   : > { %458 = vst [vmem:[%s245_s8] sm:$0xff] %v843_v56  ;;  %459 = vst [vmem:[%s245_s8 + $0x8] sm:$0xff] %v844_v57 }
 0x122   : > { %460 = vst [vmem:[%s245_s8 + $0x10] sm:$0xff] %v845_v58  ;;  %461 = vst [vmem:[%s245_s8 + $0x18] sm:$0xff] %v846_v59  ;;  %v539_v27 = vrot.slane %v532_v28, %v1203_v38 }
 0x124   : > { %v541_v30 = vmul.f32 %v539_v27, %v522_v50  ;;  %v568_v29 = vmul.f32 %v567_v35, %v539_v27 }
 0x126   : > { %v546_v40 = vrot.slane %v541_v30, %v1167_v11  ;;  %v550_v53 = vrot.slane %v541_v30, %v1169_v12  ;;  %v573_v13 = vrot.slane %v568_v29, %v1167_v11  ;;  %v577_v60 = vrot.slane %v568_v29, %v1169_v12 }
 0x128   : > { %v554_v19 = vsel %vm553_vm3, %v546_v40, 0.0  ;;  %v555_v61 = vsel %vm553_vm3, %v550_v53, 0.0  ;;  %v580_v38 = vsel %vm553_vm3, %v573_v13, 0.0  ;;  %v581_v63 = vsel %vm553_vm3, %v577_v60, 0.0 }
 0x129   : > { %v556_v62 = vadd.f32 %v555_v61, %v554_v19  ;;  %v582_v0 = vadd.f32 %v581_v63, %v580_v38 }
 0x12b   : > { %557 = vadd.xlane.f32.xlu0 %v556_v62 }
 0x12f   : > { %583 = vadd.xlane.f32.xlu0 %v582_v0 }
 0x130   : > { %948 = shalt.err (!%p945_p5)
}
 0x131   : > { %s949_s30 = scalar_lea.hbm %s1250_s13, 512  ;;  %s953_s7 = scalar_lea.hbm %s1333_s3, 1024 }
 0x132   : > { %p950_p6 = scmp.ne.s32.totalorder %s1250_s13, %s949_s30  ;;  %p954_p10 = scmp.lt.u32.totalorder %s1250_s13, %s1333_s3 }
 0x133   : > { %p955_p11 = scmp.lt.u32.totalorder %s953_s7, %s949_s30  ;;  %p957_p13 = scmp.lt.u32.totalorder %s949_s30, %s1250_s13 }
 0x134   : > { %p951_p7 = pnand %p950_p6, %p1118_p4 }
 0x135   : > { %p956_p12 = por %p955_p11, %p954_p10 }
 0x136   : > { %p952_p9 = pneg %p951_p7 }
 0x137   : > { %p958_p0 = por %p957_p13, %p956_p12 }
 0x139   : > { %p959_p1 = pnand %p958_p0, %p952_p9 }
 0x13b   : > { %962 = shalt.err (!%p959_p1)
}
 0x13c   : > { %s1050_s11 = smov 128   ;;  %s1051_s12 = smov 8   ;;  %v607_v11 = vpop.xlane.xlu1 %606  ;;  %v639_v37 = vand.u32 127, %v478_v8 }
 0x13d   : > { %858 = dma.vmem_to_hbm [thread:$0]  (%p1118_p4), %s1244_s9, 512, %s1250_s13, %s657_s14, %s1050_s11, %s1050_s11, %s1051_s12   ;;  %v608_v1 = vrot.slane %v607_v11, 4 }
 0x13e   : > { %vm640_vm6 = vcmp.eq.s32.totalorder %v639_v37, 0  ;;  %vm643_vm7 = vcmp.eq.s32.totalorder %v639_v37, 1  ;;  %vm647_vm8 = vcmp.eq.s32.totalorder %v639_v37, 2  ;;  %vm651_vm9 = vcmp.eq.s32.totalorder %v639_v37, 3  ;;  %s839_s22 = sshll.u32 %s1037_s18, 4  ;;  %s251_s24 = scalar_lea.vmem [#allocation4], %s1223_s29 }
 0x13f   : > { %v609_v3 = vadd.f32 %v608_v1, %v607_v11  ;;  %s693_s26 = sshll.u32 %s251_s24, 4  ;;  %s1282_s6 = scalar_lea.hbm %s1334_s4, %s839_s22  ;;  %s1284_s26 = int_to_ptr.vmem [resolvable:$true] %s693_s26 }
 0x140   : > { %v630_v12 = vpop.xlane.xlu1 %629  ;;  %s662_s7 = scalar_lea.sflag [#allocation5], %s1223_s29  ;;  %s963_s8 = scalar_lea.vmem %s1284_s26, 16 }
 0x141   : > { %v631_v2 = vrot.slane %v630_v12, 4  ;;  %v610_v9 = vrot.slane %v609_v3, 2  ;;  %p964_p2 = scmp.ne.s32.totalorder %s1284_s26, %s963_s8  ;;  %s1052_s18 = smov [#allocation4]  }
 0x142   : > { %s967_s10 = sshll.u32 %s1052_s18, 4  ;;  %s968_s10 = int_to_ptr.vmem [resolvable:$false] %s967_s10 }
 0x143   : > { %v632_v6 = vadd.f32 %v631_v2, %v630_v12  ;;  %v611_v20 = vadd.f32 %v610_v9, %v609_v3  ;;  %p965_p3 = pnand %p964_p2, %p1118_p4  ;;  %s969_s11 = scalar_lea.vmem %s968_s10, 32 }
 0x144   : > { %p970_p6 = scmp.lt.s32.totalorder %s1284_s26, %s968_s10  ;;  %p971_p7 = scmp.lt.s32.totalorder %s969_s11, %s963_s8 }
 0x145   : > { %v633_v15 = vrot.slane %v632_v6, 2  ;;  %v612_v26 = vrot.slane %v611_v20, 1  ;;  %p966_p5 = pneg %p965_p3 }
 0x146   : > { %p972_p9 = por %p971_p7, %p970_p6 }
 0x147   : > { %v634_v21 = vadd.f32 %v633_v15, %v632_v6  ;;  %v613_v33 = vadd.f32 %v612_v26, %v611_v20 }
 0x148   : > { %p973_p10 = pnand %p972_p9, %p966_p5 }
 0x149   : > { %v635_v32 = vrot.slane %v634_v21, 1 }
 0x14b   : > { %v636_v36 = vadd.f32 %v635_v32, %v634_v21 }
 0x1b8   : > { %v558_v4 = vpop.xlane.xlu0 %557 }
 0x1b9   : > { %v559_v5 = vrot.slane %v558_v4, 4 }
 0x1bb   : > { %v560_v7 = vadd.f32 %v559_v5, %v558_v4 }
 0x1bc   : > { %v584_v10 = vpop.xlane.xlu0 %583 }
 0x1bd   : > { %v561_v14 = vrot.slane %v560_v7, 2  ;;  %v585_v16 = vrot.slane %v584_v10, 4 }
 0x1bf   : > { %v586_v17 = vadd.f32 %v585_v16, %v584_v10  ;;  %v562_v18 = vadd.f32 %v561_v14, %v560_v7 }
 0x1c1   : > { %v587_v22 = vrot.slane %v586_v17, 2  ;;  %v563_v23 = vrot.slane %v562_v18, 1 }
 0x1c3   : > { %v588_v24 = vadd.f32 %v587_v22, %v586_v17  ;;  %v564_v25 = vadd.f32 %v563_v23, %v562_v18 }
 0x1c5   : > { %850 = vpush %v564_v25  ;;  %v589_v31 = vrot.slane %v588_v24, 1 }
 0x1c7   : > { %v590_v34 = vadd.f32 %v589_v31, %v588_v24 }
 0x1c9   : > { %852 = vpush %v590_v34 }
 0x1ca   : > { %854 = vpush %v613_v33 }
 0x1cb   : > { %856 = vpush %v636_v36 }
 0x1f6   : > { %s851_s9 = spop %850 }
 0x1f7   : > { %v641_v39 = vstv %s851_s9 }
 0x1f8   : > { %v642_v42 = vsel %vm640_vm6, %v641_v39, 0.0 }
 0x1fa   : > { %s853_s13 = spop %852 }
 0x1fb   : > { %v644_v41 = vstv %s853_s13  ;;  %s855_s14 = spop %854 }
 0x1fc   : > { %v645_v43 = vsel %vm643_vm7, %v644_v41, 0.0  ;;  %v648_v44 = vstv %s855_s14  ;;  %s857_s21 = spop %856 }
 0x1fd   : > { %v646_v45 = vadd.f32 %v645_v43, %v642_v42  ;;  %v652_v46 = vstv %s857_s21  ;;  %v649_v8 = vsel %vm647_vm8, %v648_v44, 0.0 }
 0x1fe   : > { %v653_v48 = vsel %vm651_vm9, %v652_v46, 0.0 }
 0x1ff   : > { %v650_v47 = vadd.f32 %v649_v8, %v646_v45 }
 0x201   : > { %v654_v49 = vadd.f32 %v653_v48, %v650_v47 }
 0x203   : > { %655 = vst [vmem:[%s251_s24] sm:$0x1] %v654_v49 }
 0x204   : > { %976 = shalt.err (!%p973_p10)
}
 0x205   : > { %s977_s29 = scalar_lea.hbm %s1282_s6, 16  ;;  %s981_s13 = scalar_lea.hbm %s1334_s4, 32 }
 0x206   : > { %p978_p11 = scmp.ne.s32.totalorder %s1282_s6, %s977_s29  ;;  %p982_p0 = scmp.lt.u32.totalorder %s1282_s6, %s1334_s4 }
 0x207   : > { %p983_p1 = scmp.lt.u32.totalorder %s981_s13, %s977_s29  ;;  %p985_p3 = scmp.lt.u32.totalorder %s977_s29, %s1282_s6 }
 0x208   : > { %p979_p12 = pnand %p978_p11, %p1118_p4 }
 0x209   : > { %p984_p2 = por %p983_p1, %p982_p0 }
 0x20a   : > { %p980_p13 = pneg %p979_p12 }
 0x20b   : > { %p986_p5 = por %p985_p3, %p984_p2 }
 0x20d   : > { %p987_p6 = pnand %p986_p5, %p980_p13 }
 0x20f   : > { %990 = shalt.err (!%p987_p6)
}
 0x210   : > { %859 = dma.vmem_to_hbm [thread:$0]  (%p1118_p4), %s1284_s26, 16, %s1282_s6, %s662_s7  }
 0x211 PF: > { %p869_p7 = scmp.ge.s32.totalorder %s1045_s20, 2  ;;  %s705_s22 = sand.u32 1, %s1025_s15  }
 0x212   : > { %s706_s24 = scalar_lea.sflag [#allocation3], %s705_s22 }
 0x213   : > { %p863_p9 = pnand %p869_p7, %p1125_p8 }
 0x215   : > { %1016 = dma.done.wait (!%p863_p9), %s706_s24, 512  }
 0x216   : > { %1018 = vsyncadd (!%p863_p9), %s706_s24, 4294966784  ;;  %s715_s30 = scalar_lea.sflag [#allocation5], %s705_s22 }
 0x217   : > { %1020 = dma.done.wait (!%p863_p9), %s715_s30, 16  }
 0x218   : > { %1022 = vsyncadd (!%p863_p9), %s715_s30, 4294967280  ;;  %s21_s20 = sadd.s32 1, %s1045_s20   ;;  %s1337_s15 = smov %s1029_s16 }
 0x219   : > { %p18_p10 = scmp.ge.s32.totalorder %s21_s20, 4   ;;  %s1338_s16 = smov %s1033_s17 }
 0x21a   : > { %s1339_s17 = smov %s1131_s28  ;;  %s1340_s18 = smov %s1041_s19 }
 0x21b   : > { %s1341_s19 = smov %s1343_s23  ;;  %20 = sbr.rel (!%p18_p10) target bundleno = 6 (0x6), region = 87 }
 0x222   :  { %719 = vsyncpa [#allocation3], 1 }
 0x223   :  { %721 = vsyncpa [#allocation3 + $0x1], 1 }
 0x224   :  { %722 = vsyncpa [#allocation5], 1 }
 0x225   :  { %724 = vsyncpa [#allocation5 + $0x1], 1 }

</bundles_post_ra>
